<compile_context>
chip_gen: v7x
topology: tpu7x:2x2x1
jax: 0.10.0
libtpu: 0.0.40
codegen_flags: <defaults>
</compile_context>

<pallas_src>
import numpy as np
import jax
import jax.numpy as jnp
from jax.experimental import pallas as pl
from jax.experimental.pallas import tpu as pltpu

BINS = (1, 2, 3, 4, 5, 6, 7, 8, 10, 11, 12, 13, 14, 15, 16, 17, 18, 19, 20,
        21, 22, 23, 24, 25, 30, 35)
NUM_BINS = len(BINS)            # 26
VOCAB = NUM_BINS + 1            # 27 embedding rows
VOCAB_PAD = 32                  # pad vocab to a sublane-friendly multiple of 8
_LANE = 128


def _round_up(x, m):
    return ((x + m - 1) // m) * m


def _window_bounds_f32():
    """Per-vocab-slot [low, high) ranges reproducing stoi = sum(len >= bins)."""
    low = np.full((VOCAB_PAD,), np.inf, np.float32)    # padded slots never hit
    high = np.full((VOCAB_PAD,), np.inf, np.float32)
    low[0] = -np.inf                                   # idx 0: len < bins[0]
    low[1:VOCAB] = np.asarray(BINS, np.float32)
    high[:NUM_BINS] = np.asarray(BINS, np.float32)
    high[NUM_BINS] = np.inf                            # idx 26: len >= 35
    return low, high


def _width_kernel(len_ref, repl_ref, low_ref, high_ref, table_ref, out_ref):
    # len_ref:   (TILE_R, pack)  bf16  clipped lengths (exact in bf16)
    # repl_ref:  (pack, K)       bf16  0/1 lane-replication matrix
    # low_ref:   (1, K)          f32   per-lane window lower bounds
    # high_ref:  (1, K)          f32   per-lane window upper bounds
    # table_ref: (K, OUT_W)      f32   block-diagonal embedding table
    # out_ref:   (TILE_R, OUT_W) f32   lane-dense packed output
    len_rep = jnp.dot(len_ref[...], repl_ref[...],
                      preferred_element_type=jnp.float32)        # (TILE_R, K)
    onehot = jnp.logical_and(len_rep >= low_ref[...],
                             len_rep < high_ref[...]).astype(jnp.float32)
    # Exact gather: each output row has exactly one nonzero product.
    out_ref[...] = jnp.dot(onehot, table_ref[...],
                           preferred_element_type=jnp.float32)
    # TODO(synk): nn.Dropout(0.2) is identity in eval mode; training-mode
    # stochastic dropout is intentionally not applied here.


def _choose_tile(rows, max_tile_rows):
    """Multiple-of-8 tile, >=2 grid steps when possible, bounded padding."""
    if rows <= 16:
        return rows                       # single block == full array dims
    num_tiles = max(pl.cdiv(rows, max_tile_rows), 2)
    return _round_up(pl.cdiv(rows, num_tiles), 8)


def width_forward(lengths, embed_table, *, max_tile_rows=4096):
    """lengths: (N,) int array; embed_table: (27, D) float32 -> (N, D) float32."""
    n = int(lengths.shape[0])
    d = int(embed_table.shape[1])

    # Pack `pack` consecutive lookups per 128-lane output row when D | 128.
    pack = _LANE // d if (d <= _LANE and _LANE % d == 0) else 1
    k = pack * VOCAB_PAD
    out_w = _round_up(pack * d, _LANE)    # lane-dense (unmasked-vst) output

    rows = pl.cdiv(n, pack)
    tile_r = _choose_tile(rows, max_tile_rows)
    num_tiles = pl.cdiv(rows, tile_r)     # ragged last block; no row padding

    # Lengths: clip to a bf16-exact range (never changes a bucket: bins < 36),
    # pad by at most pack-1 entries so they reshape to (rows, pack).
    len_i32 = lengths.astype(jnp.int32)
    if n != rows * pack:
        len_i32 = jnp.pad(len_i32, (0, rows * pack - n))
    len_bf16 = jnp.clip(len_i32, -100, 200).astype(jnp.bfloat16)
    len_bf16 = len_bf16.reshape(rows, pack)

    # Per-lane bucket bounds, tiled across the `pack` 32-lane windows.
    low_w, high_w = _window_bounds_f32()
    low_full = jnp.asarray(np.tile(low_w, pack).reshape(1, k))
    high_full = jnp.asarray(np.tile(high_w, pack).reshape(1, k))

    # 0/1 replication matrix: column j's length fans out to lanes [32j, 32j+32).
    repl_np = np.zeros((pack, k), np.float32)
    for j in range(pack):
        repl_np[j, j * VOCAB_PAD:(j + 1) * VOCAB_PAD] = 1.0
    repl = jnp.asarray(repl_np).astype(jnp.bfloat16)

    # Block-diagonal embedding table (vocab padded 27 -> 32 rows per window).
    table_pad = jnp.zeros((VOCAB_PAD, d), jnp.float32).at[:VOCAB].set(
        embed_table.astype(jnp.float32))
    table_bd = jnp.kron(jnp.eye(pack, dtype=jnp.float32), table_pad)  # (k, pack*d)
    if out_w > pack * d:
        table_bd = jnp.pad(table_bd, ((0, 0), (0, out_w - pack * d)))

    cost = pl.CostEstimate(
        flops=2 * rows * k * out_w + 2 * rows * pack * k,
        transcendentals=0,
        bytes_accessed=(rows * pack * 2 + rows * out_w * 4
                        + k * out_w * 4 + pack * k * 2 + 2 * k * 4))

    out_packed = pl.pallas_call(
        _width_kernel,
        out_shape=jax.ShapeDtypeStruct((rows, out_w), jnp.float32),
        grid=(num_tiles,),
        in_specs=[
            pl.BlockSpec((tile_r, pack), lambda i: (i, 0)),
            pl.BlockSpec((pack, k), lambda i: (0, 0)),     # revisited -> 1 DMA
            pl.BlockSpec((1, k), lambda i: (0, 0)),
            pl.BlockSpec((1, k), lambda i: (0, 0)),
            pl.BlockSpec((k, out_w), lambda i: (0, 0)),
        ],
        out_specs=pl.BlockSpec((tile_r, out_w), lambda i: (i, 0)),
        compiler_params=pltpu.CompilerParams(
            dimension_semantics=("parallel",)),
        cost_estimate=cost,
    )(len_bf16, repl, low_full, high_full, table_bd)

    # Free row-major unpack (rows, pack*D) -> (rows*pack, D); strip the (at
    # most pack-1) padded lookups only if any were added.
    if out_w > pack * d:
        out = out_packed[:, :pack * d].reshape(rows * pack, d)
    else:
        out = out_packed.reshape(rows * pack, d)
    if rows * pack != n:
        out = out[:n]
    return out


if __name__ == "__main__":
    key = jax.random.PRNGKey(0)
    k_len, k_emb = jax.random.split(key)

    distance_dim = 32
    n_lengths = 8

    # Deterministic synthetic inputs / parameters.
    lengths = jax.random.randint(k_len, (n_lengths,), 0, 40, dtype=jnp.int32)
    embed_table = jax.random.normal(k_emb, (VOCAB, distance_dim),
                                    dtype=jnp.float32)

    out = width_forward(lengths, embed_table)
    out = jax.block_until_ready(out)

    # Reference check in plain JAX (same semantics as Width.stoi + Embedding).
    bins_arr = jnp.array(BINS, dtype=jnp.int32)
    idx_ref = jnp.sum(lengths[:, None] >= bins_arr[None, :], axis=1)
    ref = embed_table[idx_ref]
    assert out.shape == (n_lengths, distance_dim)
    assert jnp.allclose(out, ref, atol=1e-5), "mismatch vs reference"

    print("KERNEL_OK")
</pallas_src>

<mosaic_0001>
module attributes {stable_mosaic.version = 11 : i64} {
  func.func @_width_kernel(%arg0: i32, %arg1: memref<2x4xbf16, #tpu.memory_space<vmem>>, %arg2: memref<4x128xbf16, #tpu.memory_space<vmem>>, %arg3: memref<1x128xf32, #tpu.memory_space<vmem>>, %arg4: memref<1x128xf32, #tpu.memory_space<vmem>>, %arg5: memref<128x128xf32, #tpu.memory_space<vmem>>, %arg6: memref<2x128xf32, #tpu.memory_space<vmem>>) attributes {dimension_semantics = [#tpu.dimension_semantics<parallel>], iteration_bounds = array<i64: 1>, scalar_prefetch = 0 : i64, scratch_operands = 0 : i64, tpu.core_type = #tpu.core_type<tc>, window_params = [{transform_indices = @transform_0, window_bounds = array<i64: 2, 4>}, {pipeline_mode = #tpu.pipeline_mode<synchronous>, transform_indices = @transform_1, window_bounds = array<i64: 4, 128>}, {pipeline_mode = #tpu.pipeline_mode<synchronous>, transform_indices = @transform_2, window_bounds = array<i64: 1, 128>}, {pipeline_mode = #tpu.pipeline_mode<synchronous>, transform_indices = @transform_3, window_bounds = array<i64: 1, 128>}, {pipeline_mode = #tpu.pipeline_mode<synchronous>, transform_indices = @transform_4, window_bounds = array<i64: 128, 128>}, {transform_indices = @transform_5, window_bounds = array<i64: 2, 128>}]} {
    %c0 = arith.constant 0 : index
    %c0_0 = arith.constant 0 : index
    %0 = vector.load %arg1[%c0, %c0_0] : memref<2x4xbf16, #tpu.memory_space<vmem>>, vector<2x4xbf16>
    %c0_1 = arith.constant 0 : index
    %c0_2 = arith.constant 0 : index
    %1 = vector.load %arg2[%c0_1, %c0_2] : memref<4x128xbf16, #tpu.memory_space<vmem>>, vector<4x128xbf16>
    %cst = arith.constant dense<0.000000e+00> : vector<2x128xf32>
    %2 = tpu.matmul %0, %1, %cst {dimension_numbers = #tpu.dot_dimension_numbers<[1], [0], [0], [1], [0, 0, 1, 1], [], []>} : vector<2x4xbf16>, vector<4x128xbf16>, vector<2x128xf32> -> vector<2x128xf32>
    %c0_3 = arith.constant 0 : index
    %c0_4 = arith.constant 0 : index
    %3 = vector.load %arg3[%c0_3, %c0_4] : memref<1x128xf32, #tpu.memory_space<vmem>>, vector<1x128xf32>
    %4 = vector.broadcast %3 : vector<1x128xf32> to vector<2x128xf32>
    %5 = arith.cmpf oge, %2, %4 : vector<2x128xf32>
    %c0_5 = arith.constant 0 : index
    %c0_6 = arith.constant 0 : index
    %6 = vector.load %arg4[%c0_5, %c0_6] : memref<1x128xf32, #tpu.memory_space<vmem>>, vector<1x128xf32>
    %7 = vector.broadcast %6 : vector<1x128xf32> to vector<2x128xf32>
    %8 = arith.cmpf olt, %2, %7 : vector<2x128xf32>
    %9 = arith.andi %5, %8 : vector<2x128xi1>
    %10 = arith.extui %9 : vector<2x128xi1> to vector<2x128xi32>
    %11 = arith.sitofp %10 : vector<2x128xi32> to vector<2x128xf32>
    %c0_7 = arith.constant 0 : index
    %c0_8 = arith.constant 0 : index
    %12 = vector.load %arg5[%c0_7, %c0_8] : memref<128x128xf32, #tpu.memory_space<vmem>>, vector<128x128xf32>
    %cst_9 = arith.constant dense<0.000000e+00> : vector<2x128xf32>
    %13 = tpu.matmul %11, %12, %cst_9 {dimension_numbers = #tpu.dot_dimension_numbers<[1], [0], [0], [1], [0, 0, 1, 1], [], []>} : vector<2x128xf32>, vector<128x128xf32>, vector<2x128xf32> -> vector<2x128xf32>
    %c0_10 = arith.constant 0 : index
    %c0_11 = arith.constant 0 : index
    %14 = vector.load %arg6[%c0_10, %c0_11] : memref<2x128xf32, #tpu.memory_space<vmem>>, vector<2x128xf32>
    tpu.vector_store %arg6[%c0_10, %c0_11], %13 {strides = array<i32>} : memref<2x128xf32, #tpu.memory_space<vmem>>, vector<2x128xf32>,
    return
  }
  func.func @transform_0(%arg0: i32) -> (i32, i32) {
    %c0_i32 = arith.constant 0 : i32
    %c0_i32_0 = arith.constant 0 : i32
    return %arg0, %c0_i32 : i32, i32
  }
  func.func @transform_1(%arg0: i32) -> (i32, i32) {
    %c0_i32 = arith.constant 0 : i32
    %c0_i32_0 = arith.constant 0 : i32
    %c0_i32_1 = arith.constant 0 : i32
    return %c0_i32, %c0_i32_0 : i32, i32
  }
  func.func @transform_2(%arg0: i32) -> (i32, i32) {
    %c0_i32 = arith.constant 0 : i32
    %c0_i32_0 = arith.constant 0 : i32
    %c0_i32_1 = arith.constant 0 : i32
    return %c0_i32, %c0_i32_0 : i32, i32
  }
  func.func @transform_3(%arg0: i32) -> (i32, i32) {
    %c0_i32 = arith.constant 0 : i32
    %c0_i32_0 = arith.constant 0 : i32
    %c0_i32_1 = arith.constant 0 : i32
    return %c0_i32, %c0_i32_0 : i32, i32
  }
  func.func @transform_4(%arg0: i32) -> (i32, i32) {
    %c0_i32 = arith.constant 0 : i32
    %c0_i32_0 = arith.constant 0 : i32
    %c0_i32_1 = arith.constant 0 : i32
    return %c0_i32, %c0_i32_0 : i32, i32
  }
  func.func @transform_5(%arg0: i32) -> (i32, i32) {
    %c0_i32 = arith.constant 0 : i32
    %c0_i32_0 = arith.constant 0 : i32
    return %arg0, %c0_i32 : i32, i32
  }
}

</mosaic_0001>

<bundles_post_ra>
// kernel: tpu_custom_call.1
= control target key start
LH: loop header
LB: loop body
LE: loop exit
PB: predicated region body
PF: predicated region fallthrough
CT: control target
= control target key end

     0   :  { %10 = vsyncpa [#allocation3], 0  ;;  %s481_s0 = inlined_call_operand.hbm [shape: bf16[2,4], index: 0, kind: input, shape index: {}]   ;;  %s482_s1 = inlined_call_operand.vmem [shape: bf16[4,128], index: 1, kind: input, shape index: {}]   ;;  %s483_s2 = inlined_call_operand.vmem [shape: f32[1,128], index: 2, kind: input, shape index: {}]   ;;  %s484_s3 = inlined_call_operand.vmem [shape: f32[1,128], index: 3, kind: input, shape index: {}]   ;;  %s485_s4 = inlined_call_operand.hbm [shape: f32[128,128], index: 4, kind: input, shape index: {}]   ;;  %s486_s5 = inlined_call_operand.hbm [shape: f32[2,128], index: 5, kind: output, shape index: {}]  }
   0x1   :  { %11 = vsyncpa [#allocation6], 0 }
   0x2   :  { %12 = vsyncpa [#allocation4], 0  ;;  %s390_s18 = smov [#allocation2]   ;;  %s391_s20 = smov [#allocation5]  }
   0x3   :  { %s19_s19 = sshll.u32 %s390_s18, 4  ;;  %s34_s21 = sshll.u32 %s391_s20, 4  ;;  %s20_s19 = int_to_ptr.vmem [resolvable:$true] %s19_s19  ;;  %s429_s21 = int_to_ptr.vmem [resolvable:$true] %s34_s21 }
   0x4   :  { %s318_s24 = scalar_lea.hbm %s481_s0, 16 }
   0x5   :  { %p319_p0 = scmp.ne.s32.totalorder %s481_s0, %s318_s24  ;;  %p322_p1 = scmp.lt.u32.totalorder %s318_s24, %s481_s0 }
   0x7   :  { %p324_p2 = pnand %p322_p1, %p319_p0 }
   0x9   :  { %327 = shalt.err (!%p324_p2)
}
   0xa   :  { %s328_s29 = scalar_lea.vmem %s20_s19, 16  ;;  %s332_s30 = scalar_lea.vmem %s20_s19, 32 }
   0xb   :  { %p329_p3 = scmp.ne.s32.totalorder %s20_s19, %s328_s29  ;;  %p333_p4 = scmp.lt.s32.totalorder %s20_s19, %s20_s19 }
   0xc   :  { %p334_p5 = scmp.lt.s32.totalorder %s332_s30, %s328_s29 }
   0xe   :  { %p335_p6 = por %p334_p5, %p333_p4 }
  0x10   :  { %p336_p7 = pnand %p335_p6, %p329_p3 }
  0x12   :  { %339 = shalt.err (!%p336_p7)
}
  0x13   :  { %22 = dma.hbm_to_vmem [thread:$0]  %s481_s0, 16, %s20_s19, [#allocation3]  }
  0x14   :  { %s340_s10 = scalar_lea.hbm %s485_s4, 2048 }
  0x15   :  { %p341_p8 = scmp.ne.s32.totalorder %s485_s4, %s340_s10  ;;  %p344_p9 = scmp.lt.u32.totalorder %s340_s10, %s485_s4 }
  0x17   :  { %p346_p10 = pnand %p344_p9, %p341_p8 }
  0x19   :  { %349 = shalt.err (!%p346_p10)
}
  0x1a   :  { %s350_s15 = scalar_lea.vmem %s429_s21, 2048  ;;  %p355_p12 = scmp.lt.s32.totalorder %s429_s21, %s429_s21 }
  0x1b   :  { %p351_p11 = scmp.ne.s32.totalorder %s429_s21, %s350_s15  ;;  %p356_p13 = scmp.lt.s32.totalorder %s350_s15, %s350_s15 }
  0x1d   :  { %p357_p0 = por %p356_p13, %p355_p12 }
  0x1f   :  { %p358_p1 = pnand %p357_p0, %p351_p11 }
  0x21   :  { %361 = shalt.err (!%p358_p1)
}
  0x22   :  { %s392_s0 = smov 128   ;;  %s393_s16 = smov 8  }
  0x23   :  { %40 = dma.hbm_to_vmem [thread:$0]  %s485_s4, 2048, %s429_s21, [#allocation6], %s392_s0, %s392_s0, %s393_s16  }
  0x24   :  { %384 = dma.done.wait [#allocation3], 16  }
  0x25   :  { %385 = vsyncadd [#allocation3], 4294967280 }
  0x26   :  { %386 = dma.done.wait [#allocation6], 2048  }
  0x27   :  { %387 = vsyncadd [#allocation6], 4294965248  ;;  %v394_v0 = vmov 0.0   ;;  %vm395_vm0 = vmmov 0   ;;  %v396_v1 = vmov 0.0|0.0   ;;  %vm54_vm1 = vcmask 1041408  }
  0x28   :  { %244 = vmatprep.subr.bf16.mxu0 %v394_v0  ;;  %246 = vmatprep.mubr.msk.bf16.mxu0 %vm395_vm0, %v394_v0  ;;  %v49_v2 = vld [vmem:[%s482_s1] sm:$0x3]  ;;  %v117_v3 = vld [vmem:[#allocation5] sm:$0xff]  ;;  %v118_v5 = vld [vmem:[#allocation5 + $0x8] sm:$0xff]  ;;  %vm50_vm2 = vcmask 31744   ;;  %v397_v35 = vmov 1.0  }
  0x29   :  { %285 = vmatprep.subr.bf16.mxu1 %v396_v1  ;;  %282 = vmatprep.mubr.msk.f32.mxu1 %vm395_vm0, %v394_v0  ;;  %v56_v4 = vsel %vm54_vm1, %v49_v2, 0  ;;  %v119_v6 = vld [vmem:[#allocation5 + $0x10] sm:$0xff]  ;;  %v120_v7 = vld [vmem:[#allocation5 + $0x18] sm:$0xff]  ;;  %v286_v9 = vpack.c.bf16 %v118_v5, %v117_v3  ;;  %v121_v11 = vld [vmem:[#allocation5 + $0x20] sm:$0xff]  ;;  %s398_s23 = smov [#allocation7]  }
  0x2a   :  { %245 = vmatpush3.bf16.msra.mxu0 %v56_v4  ;;  %v48_v8 = vld [vmem:[#allocation2] sm:$0x1]  ;;  %v289_v10 = vpack.c.bf16 %v120_v7, %v119_v6  ;;  %v122_v12 = vld [vmem:[#allocation5 + $0x28] sm:$0xff]  ;;  %v123_v14 = vld [vmem:[#allocation5 + $0x30] sm:$0xff]  ;;  %s210_s24 = sshll.u32 %s398_s23, 4  ;;  %s211_s24 = int_to_ptr.vmem [resolvable:$true] %s210_s24 }
  0x2b   :  { %287 = vmatpush3.bf16.msra.mxu1 %v286_v9  ;;  %v292_v13 = vpack.c.bf16 %v122_v12, %v121_v11  ;;  %v124_v15 = vld [vmem:[#allocation5 + $0x38] sm:$0xff]  ;;  %v125_v17 = vld [vmem:[#allocation5 + $0x40] sm:$0xff]  ;;  %v126_v18 = vld [vmem:[#allocation5 + $0x48] sm:$0xff]  ;;  %p367_p3 = scmp.lt.s32.totalorder %s211_s24, %s211_s24 }
  0x2c   :  { %288 = vmatprep.subr.bf16.mxu1 %v396_v1  ;;  %v295_v16 = vpack.c.bf16 %v124_v15, %v123_v14  ;;  %v298_v19 = vpack.c.bf16 %v126_v18, %v125_v17  ;;  %v127_v20 = vld [vmem:[#allocation5 + $0x50] sm:$0xff]  ;;  %v128_v21 = vld [vmem:[#allocation5 + $0x58] sm:$0xff]  ;;  %v129_v23 = vld [vmem:[#allocation5 + $0x60] sm:$0xff] }
  0x2d   :  { %247 = vmatmul.mubr.msk.bf16.vlgmr.msra.gmra.mrb[0].mxu0 %vm50_vm2, %v48_v8  ;;  %v301_v22 = vpack.c.bf16 %v128_v21, %v127_v20  ;;  %v130_v24 = vld [vmem:[#allocation5 + $0x68] sm:$0xff]  ;;  %v131_v26 = vld [vmem:[#allocation5 + $0x70] sm:$0xff]  ;;  %v132_v27 = vld [vmem:[#allocation5 + $0x78] sm:$0xff] }
  0x2e   :  { %v304_v25 = vpack.c.bf16 %v130_v24, %v129_v23  ;;  %v307_v28 = vpack.c.bf16 %v132_v27, %v131_v26  ;;  %v221_v29 = vld [vmem:[%s483_s2] ss:$0 sm:$0xff]  ;;  %s362_s2 = scalar_lea.vmem %s211_s24, 32 }
  0x2f   :  { %290 = vmatpush3.bf16.msra.mxu1 %v289_v10  ;;  %v222_v30 = vld [vmem:[%s484_s3] ss:$0 sm:$0xff]  ;;  %p363_p2 = scmp.ne.s32.totalorder %s211_s24, %s362_s2  ;;  %p368_p4 = scmp.lt.s32.totalorder %s362_s2, %s362_s2 }
  0x30   :  { %291 = vmatprep.subr.bf16.mxu1 %v396_v1 }
  0x31   :  { %p369_p5 = por %p368_p4, %p367_p3 }
  0x33   :  { %293 = vmatpush3.bf16.msra.mxu1 %v292_v13  ;;  %p370_p6 = pnand %p369_p5, %p363_p2 }
  0x34   :  { %294 = vmatprep.subr.bf16.mxu1 %v396_v1 }
  0x37   :  { %296 = vmatpush3.bf16.msra.mxu1 %v295_v16 }
  0x38   :  { %297 = vmatprep.subr.bf16.mxu1 %v396_v1 }
  0x3b   :  { %299 = vmatpush3.bf16.msra.mxu1 %v298_v19 }
  0x3c   :  { %300 = vmatprep.subr.bf16.mxu1 %v396_v1 }
  0x3f   :  { %302 = vmatpush3.bf16.msra.mxu1 %v301_v22 }
  0x40   :  { %303 = vmatprep.subr.bf16.mxu1 %v396_v1 }
  0x43   :  { %305 = vmatpush3.bf16.msra.mxu1 %v304_v25 }
  0x44   :  { %306 = vmatprep.subr.bf16.mxu1 %v396_v1 }
  0x47   :  { %308 = vmatpush3.bf16.msra.mxu1 %v307_v28 }
 0x100   :  { %v92_v31 = vpop.f32.mrb[0].mxu0 }
 0x101   :  { %vm105_vm3 = vcmp.ge.f32.partialorder %v92_v31, %v221_v29  ;;  %vm113_vm4 = vcmp.lt.f32.partialorder %v92_v31, %v222_v30  ;;  %v248_v32 = vpop.f32.mrb[1].mxu0 }
 0x102   :  { %vm114_vm5 = vmand %vm105_vm3, %vm113_vm4  ;;  %v95_v33 = vpop.f32.mrb[2].mxu0 }
 0x103   :  { %v249_v34 = vpop.f32.mrb[3].mxu0  ;;  %283 = vmatmul.mubr.msk.f32.vlgmr.msra.gmra.mrb[0].mxu1 %vm114_vm5, %v397_v35 }
 0x1d6   :  { %v199_v36 = vpop.f32.mrb[0].mxu1 }
 0x1d7   :  { %203 = vst [vmem:[#allocation7] sm:$0x3] %v199_v36  ;;  %v284_v37 = vpop.f32.mrb[1].mxu1 }
 0x1d8   :  { %373 = shalt.err (!%p370_p6)
}
 0x1d9   :  { %s374_s26 = scalar_lea.hbm %s486_s5, 32 }
 0x1da   :  { %p375_p7 = scmp.ne.s32.totalorder %s486_s5, %s374_s26  ;;  %p378_p8 = scmp.lt.u32.totalorder %s374_s26, %s486_s5 }
 0x1dc   :  { %p380_p9 = pnand %p378_p8, %p375_p7 }
 0x1de   :  { %383 = shalt.err (!%p380_p9)
}
 0x1df   :  { %213 = dma.vmem_to_hbm [thread:$0]  %s211_s24, 32, %s486_s5, [#allocation4]  }
 0x1e0   :  { %388 = dma.done.wait [#allocation4], 32  }
 0x1e1   :  { %389 = vsyncadd [#allocation4], 4294967264 }
 0x1e2   :  { %217 = vsyncpa [#allocation3], 1 }
 0x1e3   :  { %218 = vsyncpa [#allocation6], 1 }
 0x1e4   :  { %219 = vsyncpa [#allocation4], 1 }

</bundles_post_ra>
